<compile_context>
chip_gen: v5e
topology: v5e:2x2
jax: 0.10.0
libtpu: 0.0.40
codegen_flags: <defaults>
</compile_context>

<pallas_src>
import jax
import jax.numpy as jnp
from jax import lax
from jax.experimental import pallas as pl
from jax.experimental.pallas import tpu as pltpu

H1, H2, H3 = 512, 256, 128
OUT_PAD = 128  # lane-dense padded output width; the real logit is column 0


def _leaky_relu(x, slope=0.2):
    return jnp.where(x > 0, x, slope * x)


def feature_discriminator_kernel(
    x_ref,
    w1_ref, b1_ref,
    w2_ref, b2_ref,
    ln_g_ref, ln_b_ref,
    w3_ref, b3_ref,
    w4_ref, b4_ref,
    out_ref,
):
    # x / weights arrive in bf16 (MXU-native); accumulate + elementwise in f32.
    x = x_ref[...]

    # Linear(input_dim, 512) + LeakyReLU(0.2)
    h = jnp.dot(x, w1_ref[...], preferred_element_type=jnp.float32) + b1_ref[...]
    h = _leaky_relu(h)

    # Dropout(0.3): identity at inference time.
    # TODO(synk): training-mode dropout (random mask + 1/(1-p) scaling) not implemented.

    # Linear(512, 256) + LeakyReLU(0.2)
    h = jnp.dot(h.astype(jnp.bfloat16), w2_ref[...],
                preferred_element_type=jnp.float32) + b2_ref[...]
    h = _leaky_relu(h)

    # LayerNorm(256), eps=1e-5, elementwise affine (f32; lane-axis reduce -> XLU, rsqrt -> EUP)
    mean = jnp.mean(h, axis=-1, keepdims=True)
    centered = h - mean
    var = jnp.mean(centered * centered, axis=-1, keepdims=True)
    h = centered * lax.rsqrt(var + 1e-5)
    h = h * ln_g_ref[...] + ln_b_ref[...]

    # Linear(256, 128) + LeakyReLU(0.2)
    h = jnp.dot(h.astype(jnp.bfloat16), w3_ref[...],
                preferred_element_type=jnp.float32) + b3_ref[...]
    h = _leaky_relu(h)

    # Linear(128, 1 -> zero-padded to 128 lanes) + Sigmoid, stored lane-dense.
    logits = jnp.dot(h.astype(jnp.bfloat16), w4_ref[...],
                     preferred_element_type=jnp.float32) + b4_ref[...]
    # exp on EUP + approximate reciprocal on EUP (keeps the VPU free).
    out_ref[...] = pl.reciprocal(1.0 + jnp.exp(-logits), approx=True)


def _round_up(n, m):
    return (n + m - 1) // m * m


def feature_discriminator(x, params, *, tb=256):
    B, F = x.shape
    Fp = _round_up(F, 128)              # lane-dense padded feature dim
    TB = min(tb, _round_up(B, 8))       # batch tile (multiple of 8 sublanes, <= tb)
    Bp = _round_up(B, TB)               # padded batch so the tile divides evenly

    x_bf16 = x.astype(jnp.bfloat16)
    if Bp != B or Fp != F:
        x_bf16 = jnp.pad(x_bf16, ((0, Bp - B), (0, Fp - F)))

    # Zero-pad w1's input rows to match the padded feature dim (zeros contribute nothing).
    w1 = jnp.pad(params["w1"], ((0, Fp - F), (0, 0))).astype(jnp.bfloat16)
    w2 = params["w2"].astype(jnp.bfloat16)
    w3 = params["w3"].astype(jnp.bfloat16)
    # Pad the final layer to a lane-dense 128-wide output (column 0 is the real logit).
    w4 = jnp.pad(params["w4"],
                 ((0, 0), (0, OUT_PAD - params["w4"].shape[1]))).astype(jnp.bfloat16)
    b4 = jnp.pad(params["b4"], ((0, 0), (0, OUT_PAD - params["b4"].shape[1])))

    def batch_block(i):
        return (i, 0)

    def resident(i):          # constant block index -> fetched once, resident in VMEM
        return (0, 0)

    in_specs = [
        pl.BlockSpec((TB, Fp), batch_block),      # x (tiled over batch, lane-dense)
        pl.BlockSpec((Fp, H1), resident),         # w1
        pl.BlockSpec((1, H1), resident),          # b1
        pl.BlockSpec((H1, H2), resident),         # w2
        pl.BlockSpec((1, H2), resident),          # b2
        pl.BlockSpec((1, H2), resident),          # ln_g
        pl.BlockSpec((1, H2), resident),          # ln_b
        pl.BlockSpec((H2, H3), resident),         # w3
        pl.BlockSpec((1, H3), resident),          # b3
        pl.BlockSpec((H3, OUT_PAD), resident),    # w4 (zero padded to 128 lanes)
        pl.BlockSpec((1, OUT_PAD), resident),     # b4 (zero padded to 128 lanes)
    ]

    out = pl.pallas_call(
        feature_discriminator_kernel,
        out_shape=jax.ShapeDtypeStruct((Bp, OUT_PAD), jnp.float32),
        grid=(Bp // TB,),
        in_specs=in_specs,
        out_specs=pl.BlockSpec((TB, OUT_PAD), batch_block),
        compiler_params=pltpu.CompilerParams(
            dimension_semantics=("parallel",),
        ),
    )(
        x_bf16,
        w1, params["b1"],
        w2, params["b2"],
        params["ln_g"], params["ln_b"],
        w3, params["b3"],
        w4, b4,
    )
    # Un-pad: real output is column 0 of the first B rows.
    return out[:B, :1]


def init_params(key, input_dim):
    ks = jax.random.split(key, 8)

    def linear(kw, kb, fan_in, fan_out):
        # Mimics PyTorch's uniform(-1/sqrt(fan_in), 1/sqrt(fan_in)) init.
        bound = 1.0 / jnp.sqrt(jnp.float32(fan_in))
        w = jax.random.uniform(kw, (fan_in, fan_out), jnp.float32, -bound, bound)
        b = jax.random.uniform(kb, (1, fan_out), jnp.float32, -bound, bound)
        return w, b

    w1, b1 = linear(ks[0], ks[1], input_dim, H1)
    w2, b2 = linear(ks[2], ks[3], H1, H2)
    w3, b3 = linear(ks[4], ks[5], H2, H3)
    w4, b4 = linear(ks[6], ks[7], H3, 1)
    return {
        "w1": w1, "b1": b1,
        "w2": w2, "b2": b2,
        "ln_g": jnp.ones((1, H2), jnp.float32),
        "ln_b": jnp.zeros((1, H2), jnp.float32),
        "w3": w3, "b3": b3,
        "w4": w4, "b4": b4,
    }


def _reference(x, p):
    # Pure-JAX reference mirroring the kernel's dtype policy (bf16 MXU inputs,
    # f32 accumulation / elementwise) so the comparison is apples-to-apples.
    bf = jnp.bfloat16

    def lrelu(v):
        return jnp.where(v > 0, v, 0.2 * v)

    h = lrelu(jnp.dot(x.astype(bf), p["w1"].astype(bf),
                      preferred_element_type=jnp.float32) + p["b1"])
    h = lrelu(jnp.dot(h.astype(bf), p["w2"].astype(bf),
                      preferred_element_type=jnp.float32) + p["b2"])
    mu = jnp.mean(h, axis=-1, keepdims=True)
    var = jnp.mean((h - mu) ** 2, axis=-1, keepdims=True)
    h = (h - mu) / jnp.sqrt(var + 1e-5) * p["ln_g"] + p["ln_b"]
    h = lrelu(jnp.dot(h.astype(bf), p["w3"].astype(bf),
                      preferred_element_type=jnp.float32) + p["b3"])
    logit = jnp.dot(h.astype(bf), p["w4"].astype(bf),
                    preferred_element_type=jnp.float32) + p["b4"]
    return jax.nn.sigmoid(logit)


if __name__ == "__main__":
    key = jax.random.PRNGKey(0)
    k_x, k_p = jax.random.split(key)

    batch = 8
    input_dim = 32
    x = jax.random.normal(k_x, (batch, input_dim), jnp.float32)
    params = init_params(k_p, input_dim)

    out = feature_discriminator(x, params)
    out = jax.block_until_ready(out)

    ref = _reference(x, params)
    assert out.shape == (batch, 1)
    assert jnp.allclose(out, ref, atol=1e-2, rtol=1e-2), (
        f"max abs err {jnp.max(jnp.abs(out - ref))}")
    print("KERNEL_OK")
</pallas_src>

<mosaic_0001>
module attributes {stable_mosaic.version = 11 : i64} {
  func.func @feature_discriminator_kernel(%arg0: i32, %arg1: memref<8x128xbf16, #tpu.memory_space<vmem>>, %arg2: memref<128x512xbf16, #tpu.memory_space<vmem>>, %arg3: memref<1x512xf32, #tpu.memory_space<vmem>>, %arg4: memref<512x256xbf16, #tpu.memory_space<vmem>>, %arg5: memref<1x256xf32, #tpu.memory_space<vmem>>, %arg6: memref<1x256xf32, #tpu.memory_space<vmem>>, %arg7: memref<1x256xf32, #tpu.memory_space<vmem>>, %arg8: memref<256x128xbf16, #tpu.memory_space<vmem>>, %arg9: memref<1x128xf32, #tpu.memory_space<vmem>>, %arg10: memref<128x128xbf16, #tpu.memory_space<vmem>>, %arg11: memref<1x128xf32, #tpu.memory_space<vmem>>, %arg12: memref<8x128xf32, #tpu.memory_space<vmem>>) attributes {dimension_semantics = [#tpu.dimension_semantics<parallel>], iteration_bounds = array<i64: 1>, scalar_prefetch = 0 : i64, scratch_operands = 0 : i64, tpu.core_type = #tpu.core_type<tc>, window_params = [{transform_indices = @transform_0, window_bounds = array<i64: 8, 128>}, {pipeline_mode = #tpu.pipeline_mode<synchronous>, transform_indices = @transform_1, window_bounds = array<i64: 128, 512>}, {pipeline_mode = #tpu.pipeline_mode<synchronous>, transform_indices = @transform_2, window_bounds = array<i64: 1, 512>}, {pipeline_mode = #tpu.pipeline_mode<synchronous>, transform_indices = @transform_3, window_bounds = array<i64: 512, 256>}, {pipeline_mode = #tpu.pipeline_mode<synchronous>, transform_indices = @transform_4, window_bounds = array<i64: 1, 256>}, {pipeline_mode = #tpu.pipeline_mode<synchronous>, transform_indices = @transform_5, window_bounds = array<i64: 1, 256>}, {pipeline_mode = #tpu.pipeline_mode<synchronous>, transform_indices = @transform_6, window_bounds = array<i64: 1, 256>}, {pipeline_mode = #tpu.pipeline_mode<synchronous>, transform_indices = @transform_7, window_bounds = array<i64: 256, 128>}, {pipeline_mode = #tpu.pipeline_mode<synchronous>, transform_indices = @transform_8, window_bounds = array<i64: 1, 128>}, {pipeline_mode = #tpu.pipeline_mode<synchronous>, transform_indices = @transform_9, window_bounds = array<i64: 128, 128>}, {pipeline_mode = #tpu.pipeline_mode<synchronous>, transform_indices = @transform_10, window_bounds = array<i64: 1, 128>}, {transform_indices = @transform_11, window_bounds = array<i64: 8, 128>}]} {
    %c0 = arith.constant 0 : index
    %c0_0 = arith.constant 0 : index
    %0 = vector.load %arg1[%c0, %c0_0] : memref<8x128xbf16, #tpu.memory_space<vmem>>, vector<8x128xbf16>
    %c0_1 = arith.constant 0 : index
    %c0_2 = arith.constant 0 : index
    %1 = vector.load %arg2[%c0_1, %c0_2] : memref<128x512xbf16, #tpu.memory_space<vmem>>, vector<128x512xbf16>
    %cst = arith.constant dense<0.000000e+00> : vector<8x512xf32>
    %2 = tpu.matmul %0, %1, %cst {dimension_numbers = #tpu.dot_dimension_numbers<[1], [0], [0], [1], [0, 0, 1, 1], [], []>} : vector<8x128xbf16>, vector<128x512xbf16>, vector<8x512xf32> -> vector<8x512xf32>
    %c0_3 = arith.constant 0 : index
    %c0_4 = arith.constant 0 : index
    %3 = vector.load %arg3[%c0_3, %c0_4] : memref<1x512xf32, #tpu.memory_space<vmem>>, vector<1x512xf32>
    %4 = vector.broadcast %3 : vector<1x512xf32> to vector<8x512xf32>
    %5 = arith.addf %2, %4 : vector<8x512xf32>
    %cst_5 = arith.constant 0.000000e+00 : f32
    %6 = vector.broadcast %cst_5 : f32 to vector<8x512xf32>
    %7 = arith.cmpf ogt, %5, %6 : vector<8x512xf32>
    %cst_6 = arith.constant 2.000000e-01 : f32
    %8 = vector.broadcast %cst_6 : f32 to vector<8x512xf32>
    %9 = arith.mulf %8, %5 : vector<8x512xf32>
    %10 = arith.select %7, %5, %9 : vector<8x512xi1>, vector<8x512xf32>
    %11 = arith.truncf %10 : vector<8x512xf32> to vector<8x512xbf16>
    %c0_7 = arith.constant 0 : index
    %c0_8 = arith.constant 0 : index
    %12 = vector.load %arg4[%c0_7, %c0_8] : memref<512x256xbf16, #tpu.memory_space<vmem>>, vector<512x256xbf16>
    %cst_9 = arith.constant dense<0.000000e+00> : vector<8x256xf32>
    %13 = tpu.matmul %11, %12, %cst_9 {dimension_numbers = #tpu.dot_dimension_numbers<[1], [0], [0], [1], [0, 0, 1, 1], [], []>} : vector<8x512xbf16>, vector<512x256xbf16>, vector<8x256xf32> -> vector<8x256xf32>
    %c0_10 = arith.constant 0 : index
    %c0_11 = arith.constant 0 : index
    %14 = vector.load %arg5[%c0_10, %c0_11] : memref<1x256xf32, #tpu.memory_space<vmem>>, vector<1x256xf32>
    %15 = vector.broadcast %14 : vector<1x256xf32> to vector<8x256xf32>
    %16 = arith.addf %13, %15 : vector<8x256xf32>
    %cst_12 = arith.constant 0.000000e+00 : f32
    %17 = vector.broadcast %cst_12 : f32 to vector<8x256xf32>
    %18 = arith.cmpf ogt, %16, %17 : vector<8x256xf32>
    %cst_13 = arith.constant 2.000000e-01 : f32
    %19 = vector.broadcast %cst_13 : f32 to vector<8x256xf32>
    %20 = arith.mulf %19, %16 : vector<8x256xf32>
    %21 = arith.select %18, %16, %20 : vector<8x256xi1>, vector<8x256xf32>
    %cst_14 = arith.constant dense<0.000000e+00> : vector<8xf32>
    %22 = vector.multi_reduction <add>, %21, %cst_14 [1] : vector<8x256xf32> to vector<8xf32>
    %23 = vector.shape_cast %22 : vector<8xf32> to vector<8x1xf32>
    %cst_15 = arith.constant 2.560000e+02 : f32
    %24 = vector.broadcast %cst_15 : f32 to vector<8x1xf32>
    %25 = arith.divf %23, %24 : vector<8x1xf32>
    %26 = vector.broadcast %25 : vector<8x1xf32> to vector<8x256xf32>
    %27 = arith.subf %21, %26 : vector<8x256xf32>
    %28 = arith.mulf %27, %27 : vector<8x256xf32>
    %cst_16 = arith.constant dense<0.000000e+00> : vector<8xf32>
    %29 = vector.multi_reduction <add>, %28, %cst_16 [1] : vector<8x256xf32> to vector<8xf32>
    %30 = vector.shape_cast %29 : vector<8xf32> to vector<8x1xf32>
    %cst_17 = arith.constant 2.560000e+02 : f32
    %31 = vector.broadcast %cst_17 : f32 to vector<8x1xf32>
    %32 = arith.divf %30, %31 : vector<8x1xf32>
    %cst_18 = arith.constant 9.99999974E-6 : f32
    %33 = vector.broadcast %cst_18 : f32 to vector<8x1xf32>
    %34 = arith.addf %32, %33 : vector<8x1xf32>
    %35 = math.rsqrt %34 : vector<8x1xf32>
    %36 = vector.broadcast %35 : vector<8x1xf32> to vector<8x256xf32>
    %37 = arith.mulf %27, %36 : vector<8x256xf32>
    %c0_19 = arith.constant 0 : index
    %c0_20 = arith.constant 0 : index
    %38 = vector.load %arg6[%c0_19, %c0_20] : memref<1x256xf32, #tpu.memory_space<vmem>>, vector<1x256xf32>
    %39 = vector.broadcast %38 : vector<1x256xf32> to vector<8x256xf32>
    %40 = arith.mulf %37, %39 : vector<8x256xf32>
    %c0_21 = arith.constant 0 : index
    %c0_22 = arith.constant 0 : index
    %41 = vector.load %arg7[%c0_21, %c0_22] : memref<1x256xf32, #tpu.memory_space<vmem>>, vector<1x256xf32>
    %42 = vector.broadcast %41 : vector<1x256xf32> to vector<8x256xf32>
    %43 = arith.addf %40, %42 : vector<8x256xf32>
    %44 = arith.truncf %43 : vector<8x256xf32> to vector<8x256xbf16>
    %c0_23 = arith.constant 0 : index
    %c0_24 = arith.constant 0 : index
    %45 = vector.load %arg8[%c0_23, %c0_24] : memref<256x128xbf16, #tpu.memory_space<vmem>>, vector<256x128xbf16>
    %cst_25 = arith.constant dense<0.000000e+00> : vector<8x128xf32>
    %46 = tpu.matmul %44, %45, %cst_25 {dimension_numbers = #tpu.dot_dimension_numbers<[1], [0], [0], [1], [0, 0, 1, 1], [], []>} : vector<8x256xbf16>, vector<256x128xbf16>, vector<8x128xf32> -> vector<8x128xf32>
    %c0_26 = arith.constant 0 : index
    %c0_27 = arith.constant 0 : index
    %47 = vector.load %arg9[%c0_26, %c0_27] : memref<1x128xf32, #tpu.memory_space<vmem>>, vector<1x128xf32>
    %48 = vector.broadcast %47 : vector<1x128xf32> to vector<8x128xf32>
    %49 = arith.addf %46, %48 : vector<8x128xf32>
    %cst_28 = arith.constant 0.000000e+00 : f32
    %50 = vector.broadcast %cst_28 : f32 to vector<8x128xf32>
    %51 = arith.cmpf ogt, %49, %50 : vector<8x128xf32>
    %cst_29 = arith.constant 2.000000e-01 : f32
    %52 = vector.broadcast %cst_29 : f32 to vector<8x128xf32>
    %53 = arith.mulf %52, %49 : vector<8x128xf32>
    %54 = arith.select %51, %49, %53 : vector<8x128xi1>, vector<8x128xf32>
    %55 = arith.truncf %54 : vector<8x128xf32> to vector<8x128xbf16>
    %c0_30 = arith.constant 0 : index
    %c0_31 = arith.constant 0 : index
    %56 = vector.load %arg10[%c0_30, %c0_31] : memref<128x128xbf16, #tpu.memory_space<vmem>>, vector<128x128xbf16>
    %cst_32 = arith.constant dense<0.000000e+00> : vector<8x128xf32>
    %57 = tpu.matmul %55, %56, %cst_32 {dimension_numbers = #tpu.dot_dimension_numbers<[1], [0], [0], [1], [0, 0, 1, 1], [], []>} : vector<8x128xbf16>, vector<128x128xbf16>, vector<8x128xf32> -> vector<8x128xf32>
    %c0_33 = arith.constant 0 : index
    %c0_34 = arith.constant 0 : index
    %58 = vector.load %arg11[%c0_33, %c0_34] : memref<1x128xf32, #tpu.memory_space<vmem>>, vector<1x128xf32>
    %59 = vector.broadcast %58 : vector<1x128xf32> to vector<8x128xf32>
    %60 = arith.addf %57, %59 : vector<8x128xf32>
    %cst_35 = arith.constant 0.000000e+00 : f32
    %61 = vector.broadcast %cst_35 : f32 to vector<8x128xf32>
    %62 = arith.subf %61, %60 : vector<8x128xf32>
    %63 = math.exp %62 : vector<8x128xf32>
    %cst_36 = arith.constant 1.000000e+00 : f32
    %64 = vector.broadcast %cst_36 : f32 to vector<8x128xf32>
    %65 = arith.addf %64, %63 : vector<8x128xf32>
    %66 = tpu.reciprocal %65 {approx = true} : vector<8x128xf32> -> vector<8x128xf32>
    %c0_37 = arith.constant 0 : index
    %c0_38 = arith.constant 0 : index
    %67 = vector.load %arg12[%c0_37, %c0_38] : memref<8x128xf32, #tpu.memory_space<vmem>>, vector<8x128xf32>
    tpu.vector_store %arg12[%c0_37, %c0_38], %66 {strides = array<i32>} : memref<8x128xf32, #tpu.memory_space<vmem>>, vector<8x128xf32>,
    return
  }
  func.func @transform_0(%arg0: i32) -> (i32, i32) {
    %c0_i32 = arith.constant 0 : i32
    %c0_i32_0 = arith.constant 0 : i32
    return %arg0, %c0_i32 : i32, i32
  }
  func.func @transform_1(%arg0: i32) -> (i32, i32) {
    %c0_i32 = arith.constant 0 : i32
    %c0_i32_0 = arith.constant 0 : i32
    %c0_i32_1 = arith.constant 0 : i32
    return %c0_i32, %c0_i32_0 : i32, i32
  }
  func.func @transform_2(%arg0: i32) -> (i32, i32) {
    %c0_i32 = arith.constant 0 : i32
    %c0_i32_0 = arith.constant 0 : i32
    %c0_i32_1 = arith.constant 0 : i32
    return %c0_i32, %c0_i32_0 : i32, i32
  }
  func.func @transform_3(%arg0: i32) -> (i32, i32) {
    %c0_i32 = arith.constant 0 : i32
    %c0_i32_0 = arith.constant 0 : i32
    %c0_i32_1 = arith.constant 0 : i32
    return %c0_i32, %c0_i32_0 : i32, i32
  }
  func.func @transform_4(%arg0: i32) -> (i32, i32) {
    %c0_i32 = arith.constant 0 : i32
    %c0_i32_0 = arith.constant 0 : i32
    %c0_i32_1 = arith.constant 0 : i32
    return %c0_i32, %c0_i32_0 : i32, i32
  }
  func.func @transform_5(%arg0: i32) -> (i32, i32) {
    %c0_i32 = arith.constant 0 : i32
    %c0_i32_0 = arith.constant 0 : i32
    %c0_i32_1 = arith.constant 0 : i32
    return %c0_i32, %c0_i32_0 : i32, i32
  }
  func.func @transform_6(%arg0: i32) -> (i32, i32) {
    %c0_i32 = arith.constant 0 : i32
    %c0_i32_0 = arith.constant 0 : i32
    %c0_i32_1 = arith.constant 0 : i32
    return %c0_i32, %c0_i32_0 : i32, i32
  }
  func.func @transform_7(%arg0: i32) -> (i32, i32) {
    %c0_i32 = arith.constant 0 : i32
    %c0_i32_0 = arith.constant 0 : i32
    %c0_i32_1 = arith.constant 0 : i32
    return %c0_i32, %c0_i32_0 : i32, i32
  }
  func.func @transform_8(%arg0: i32) -> (i32, i32) {
    %c0_i32 = arith.constant 0 : i32
    %c0_i32_0 = arith.constant 0 : i32
    %c0_i32_1 = arith.constant 0 : i32
    return %c0_i32, %c0_i32_0 : i32, i32
  }
  func.func @transform_9(%arg0: i32) -> (i32, i32) {
    %c0_i32 = arith.constant 0 : i32
    %c0_i32_0 = arith.constant 0 : i32
    %c0_i32_1 = arith.constant 0 : i32
    return %c0_i32, %c0_i32_0 : i32, i32
  }
  func.func @transform_10(%arg0: i32) -> (i32, i32) {
    %c0_i32 = arith.constant 0 : i32
    %c0_i32_0 = arith.constant 0 : i32
    %c0_i32_1 = arith.constant 0 : i32
    return %c0_i32, %c0_i32_0 : i32, i32
  }
  func.func @transform_11(%arg0: i32) -> (i32, i32) {
    %c0_i32 = arith.constant 0 : i32
    %c0_i32_0 = arith.constant 0 : i32
    return %arg0, %c0_i32 : i32, i32
  }
}

</mosaic_0001>

<bundles_post_ra>
// kernel: tpu_custom_call.1
= control target key start
LH: loop header
LB: loop body
LE: loop exit
PB: predicated region body
PF: predicated region fallthrough
CT: control target
= control target key end

     0   :  { %16 = vsyncpa [#allocation3], 0  ;;  %s2180_s0 = inlined_call_operand.hbm [shape: bf16[8,128], index: 0, kind: input, shape index: {}]   ;;  %s2181_s1 = inlined_call_operand.hbm [shape: bf16[128,512], index: 1, kind: input, shape index: {}]   ;;  %s2182_s2 = inlined_call_operand.hbm [shape: f32[1,512], index: 2, kind: input, shape index: {}]   ;;  %s2183_s3 = inlined_call_operand.hbm [shape: bf16[512,256], index: 3, kind: input, shape index: {}]   ;;  %s2184_s4 = inlined_call_operand.vmem [shape: f32[1,256], index: 4, kind: input, shape index: {}]   ;;  %s2185_s5 = inlined_call_operand.vmem [shape: f32[1,256], index: 5, kind: input, shape index: {}]   ;;  %s2186_s6 = inlined_call_operand.hbm [shape: f32[1,256], index: 6, kind: input, shape index: {}]   ;;  %s2187_s7 = inlined_call_operand.hbm [shape: bf16[256,128], index: 7, kind: input, shape index: {}]   ;;  %s2188_s8 = inlined_call_operand.vmem [shape: f32[1,128], index: 8, kind: input, shape index: {}]   ;;  %s2189_s9 = inlined_call_operand.hbm [shape: bf16[128,128], index: 9, kind: input, shape index: {}]   ;;  %s2190_s10 = inlined_call_operand.vmem [shape: f32[1,128], index: 10, kind: input, shape index: {}]   ;;  %s2191_s11 = inlined_call_operand.hbm [shape: f32[8,128], index: 11, kind: output, shape index: {}]  }
   0x1   :  { %17 = vsyncpa [#allocation6], 0 }
   0x2   :  { %18 = vsyncpa [#allocation9], 0 }
   0x3   :  { %19 = vsyncpa [#allocation12], 0  ;;  %s36_s19 = sshll.u32 %s2181_s1, 4  ;;  %s37_s19 = int_to_ptr.hbm [resolvable:$true] %s36_s19 }
   0x4   :  { %20 = vsyncpa [#allocation4], 0  ;;  %s2059_s20 = smov [#allocation5]   ;;  %s60_s24 = sshll.u32 %s2183_s3, 4  ;;  %s61_s24 = int_to_ptr.hbm [resolvable:$true] %s60_s24 }
   0x5   :  { %s38_s21 = sshll.u32 %s2059_s20, 4  ;;  %s2060_s25 = smov 256   ;;  %s39_s21 = int_to_ptr.vmem [resolvable:$true] %s38_s21 }
   0x6   :  { %s2061_s26 = smov 16   ;;  %s2062_s27 = smov [#allocation8]  }
   0x7   :  { %44 = dma.hbm_to_vmem [thread:$0]  %s37_s19, 4096, %s39_s21, [#allocation6], %s2060_s25, %s2060_s25, %s2061_s26  }
   0x8   :  { %s62_s28 = sshll.u32 %s2062_s27, 4  ;;  %s2063_s29 = smov 128   ;;  %s63_s28 = int_to_ptr.vmem [resolvable:$true] %s62_s28 }
   0x9   :  { %s2064_s30 = smov 8   ;;  %s88_s13 = sshll.u32 %s2187_s7, 4  ;;  %s89_s13 = int_to_ptr.hbm [resolvable:$true] %s88_s13 }
   0xa   :  { %68 = dma.hbm_to_vmem [thread:$0]  %s61_s24, 8192, %s63_s28, [#allocation9], %s2063_s29, %s2063_s29, %s2064_s30  }
   0xb   :  { %s2065_s14 = smov [#allocation11]   ;;  %s26_s17 = sshll.u32 %s2180_s0, 4  ;;  %s27_s17 = int_to_ptr.hbm [resolvable:$true] %s26_s17 }
   0xc   :  { %s90_s15 = sshll.u32 %s2065_s14, 4  ;;  %s2066_s18 = smov 64   ;;  %s91_s15 = int_to_ptr.vmem [resolvable:$true] %s90_s15 }
   0xd   :  { %s2067_s19 = smov 4   ;;  %s2068_s20 = smov [#allocation2]  }
   0xe   :  { %96 = dma.hbm_to_vmem [thread:$0]  %s89_s13, 2048, %s91_s15, [#allocation12], %s2066_s18, %s2066_s18, %s2067_s19  }
   0xf   :  { %s28_s21 = sshll.u32 %s2068_s20, 4  ;;  %s50_s24 = sshll.u32 %s2182_s2, 4  ;;  %s29_s21 = int_to_ptr.vmem [resolvable:$true] %s28_s21  ;;  %s51_s24 = int_to_ptr.hbm [resolvable:$true] %s50_s24 }
  0x10   :  { %31 = dma.hbm_to_vmem [thread:$0]  %s27_s17, 64, %s29_s21, [#allocation3]  }
  0x11   :  { %s78_s26 = sshll.u32 %s2186_s6, 4  ;;  %s2069_s27 = smov [#allocation7]   ;;  %s79_s26 = int_to_ptr.hbm [resolvable:$true] %s78_s26 }
  0x12   :  { %s52_s28 = sshll.u32 %s2069_s27, 4  ;;  %s2070_s0 = smov [#allocation10]   ;;  %s53_s28 = int_to_ptr.vmem [resolvable:$true] %s52_s28 }
  0x13   :  { %55 = dma.hbm_to_vmem [thread:$0]  %s51_s24, 64, %s53_s28, [#allocation6]  }
  0x14   :  { %s80_s29 = sshll.u32 %s2070_s0, 4  ;;  %s103_s12 = sshll.u32 %s2189_s9, 4  ;;  %s81_s29 = int_to_ptr.vmem [resolvable:$true] %s80_s29  ;;  %s104_s12 = int_to_ptr.hbm [resolvable:$true] %s103_s12 }
  0x15   :  { %83 = dma.hbm_to_vmem [thread:$0]  %s79_s26, 32, %s81_s29, [#allocation9]  }
  0x16   :  { %s2071_s2 = smov [#allocation13]  }
  0x17   :  { %s105_s13 = sshll.u32 %s2071_s2, 4  ;;  %s106_s13 = int_to_ptr.vmem [resolvable:$true] %s105_s13 }
  0x18   :  { %111 = dma.hbm_to_vmem [thread:$0]  %s104_s12, 1024, %s106_s13, [#allocation12], %s2066_s18, %s2066_s18, %s2067_s19  }
  0x19   :  { %2049 = dma.done.wait [#allocation3], 64  }
  0x1a   :  { %2050 = vsyncadd [#allocation3], 4294967232 }
  0x1b   :  { %2051 = dma.done.wait [#allocation6], 4160  }
  0x1c   :  { %2052 = vsyncadd [#allocation6], 4294963136 }
  0x1d   :  { %2053 = dma.done.wait [#allocation9], 8224  }
  0x1e   :  { %2054 = vsyncadd [#allocation9], 4294959072 }
  0x1f   :  { %2055 = dma.done.wait [#allocation12], 3072  }
  0x20   :  { %2056 = vsyncadd [#allocation12], 4294964224  ;;  %v1346_v0 = vld [vmem:[#allocation5 + $0xe0] sm:$0xf]  ;;  %v1742_v1 = vld [vmem:[#allocation5 + $0xec] sm:$0xf0] }
  0x21   :  { %v1740_v2 = vld [vmem:[#allocation5 + $0xe4] sm:$0xf]  ;;  %v1347_v3 = vor.u32 %v1742_v1, %v1346_v0  ;;  %v1348_v4 = vld [vmem:[#allocation5 + $0xf0] sm:$0xf0]  ;;  %v1354_v5 = vld [vmem:[#allocation5 + $0xe8] sm:$0xf] }
  0x22   :  { %v1743_v6 = vld [vmem:[#allocation5 + $0xf4] sm:$0xf0]  ;;  %v1351_v7 = vor.u32 %v1740_v2, %v1348_v4  ;;  %v1741_v9 = vld [vmem:[#allocation5 + $0xec] sm:$0xf]  ;;  %v1356_v10 = vld [vmem:[#allocation5 + $0xf8] sm:$0xf0] }
  0x23   :  { %v1355_v8 = vor.u32 %v1743_v6, %v1354_v5  ;;  %v1330_v11 = vld [vmem:[#allocation5 + $0xc0] sm:$0xf]  ;;  %345 = vmatpush.bf16.msra.mxu0 %v1347_v3  ;;  %v1359_v12 = vor.u32 %v1741_v9, %v1356_v10  ;;  %v1738_v13 = vld [vmem:[#allocation5 + $0xcc] sm:$0xf0]  ;;  %v1736_v14 = vld [vmem:[#allocation5 + $0xc4] sm:$0xf] }
  0x24   :  { %v1332_v15 = vld [vmem:[#allocation5 + $0xd0] sm:$0xf0]  ;;  %358 = vmatpush.bf16.msra.mxu1 %v1351_v7  ;;  %v1331_v16 = vor.u32 %v1738_v13, %v1330_v11  ;;  %v1338_v18 = vld [vmem:[#allocation5 + $0xc8] sm:$0xf]  ;;  %v1739_v19 = vld [vmem:[#allocation5 + $0xd4] sm:$0xf0] }
  0x25   :  { %371 = vmatpush.bf16.msra.mxu2 %v1355_v8  ;;  %v1335_v17 = vor.u32 %v1736_v14, %v1332_v15  ;;  %v1737_v20 = vld [vmem:[#allocation5 + $0xcc] sm:$0xf]  ;;  %384 = vmatpush.bf16.msra.mxu3 %v1359_v12  ;;  %v1339_v21 = vor.u32 %v1739_v19, %v1338_v18  ;;  %v1340_v22 = vld [vmem:[#allocation5 + $0xd8] sm:$0xf0]  ;;  %v1314_v23 = vld [vmem:[#allocation5 + $0xa0] sm:$0xf] }
  0x26   :  { %v1734_v24 = vld [vmem:[#allocation5 + $0xac] sm:$0xf0]  ;;  %v1343_v25 = vor.u32 %v1737_v20, %v1340_v22  ;;  %v1732_v26 = vld [vmem:[#allocation5 + $0xa4] sm:$0xf]  ;;  %v1316_v27 = vld [vmem:[#allocation5 + $0xb0] sm:$0xf0] }
  0x27   :  { %v1322_v28 = vld [vmem:[#allocation5 + $0xa8] sm:$0xf]  ;;  %346 = vmatpush.bf16.msra.mxu0 %v1331_v16  ;;  %v1315_v29 = vor.u32 %v1734_v24, %v1314_v23  ;;  %v1735_v30 = vld [vmem:[#allocation5 + $0xb4] sm:$0xf0]  ;;  %v1733_v31 = vld [vmem:[#allocation5 + $0xac] sm:$0xf]  ;;  %v1319_v33 = vor.u32 %v1732_v26, %v1316_v27 }
  0x28   :  { %v1324_v32 = vld [vmem:[#allocation5 + $0xb8] sm:$0xf0]  ;;  %359 = vmatpush.bf16.msra.mxu1 %v1335_v17  ;;  %v1323_v34 = vor.u32 %v1735_v30, %v1322_v28  ;;  %v1298_v35 = vld [vmem:[#allocation5 + $0x80] sm:$0xf]  ;;  %v1730_v36 = vld [vmem:[#allocation5 + $0x8c] sm:$0xf0] }
  0x29   :  { %372 = vmatpush.bf16.msra.mxu2 %v1339_v21  ;;  %v1728_v37 = vld [vmem:[#allocation5 + $0x84] sm:$0xf]  ;;  %385 = vmatpush.bf16.msra.mxu3 %v1343_v25  ;;  %v1327_v38 = vor.u32 %v1733_v31, %v1324_v32  ;;  %v1300_v39 = vld [vmem:[#allocation5 + $0x90] sm:$0xf0]  ;;  %v1306_v40 = vld [vmem:[#allocation5 + $0x88] sm:$0xf]  ;;  %v1299_v44 = vor.u32 %v1730_v36, %v1298_v35 }
  0x2a   :  { %v1731_v41 = vld [vmem:[#allocation5 + $0x94] sm:$0xf0]  ;;  %v1729_v42 = vld [vmem:[#allocation5 + $0x8c] sm:$0xf]  ;;  %v1308_v43 = vld [vmem:[#allocation5 + $0x98] sm:$0xf0]  ;;  %v1303_v45 = vor.u32 %v1728_v37, %v1300_v39 }
  0x2b   :  { %347 = vmatpush.bf16.msra.mxu0 %v1315_v29  ;;  %v1307_v46 = vor.u32 %v1731_v41, %v1306_v40  ;;  %v1282_v47 = vld [vmem:[#allocation5 + $0x60] sm:$0xf]  ;;  %v1726_v48 = vld [vmem:[#allocation5 + $0x6c] sm:$0xf0]  ;;  %v1724_v49 = vld [vmem:[#allocation5 + $0x64] sm:$0xf]  ;;  %v1311_v50 = vor.u32 %v1729_v42, %v1308_v43 }
  0x2c   :  { %360 = vmatpush.bf16.msra.mxu1 %v1319_v33  ;;  %v1284_v51 = vld [vmem:[#allocation5 + $0x70] sm:$0xf0]  ;;  %v1290_v52 = vld [vmem:[#allocation5 + $0x68] sm:$0xf]  ;;  %v1727_v53 = vld [vmem:[#allocation5 + $0x74] sm:$0xf0]  ;;  %v1283_v56 = vor.u32 %v1726_v48, %v1282_v47 }
  0x2d   :  { %373 = vmatpush.bf16.msra.mxu2 %v1323_v34  ;;  %386 = vmatpush.bf16.msra.mxu3 %v1327_v38  ;;  %v1725_v54 = vld [vmem:[#allocation5 + $0x6c] sm:$0xf]  ;;  %v1292_v55 = vld [vmem:[#allocation5 + $0x78] sm:$0xf0]  ;;  %v1287_v57 = vor.u32 %v1724_v49, %v1284_v51  ;;  %v1291_v58 = vor.u32 %v1727_v53, %v1290_v52  ;;  %v1266_v59 = vld [vmem:[#allocation5 + $0x40] sm:$0xf] }
  0x2e   :  { %v1722_v60 = vld [vmem:[#allocation5 + $0x4c] sm:$0xf0]  ;;  %v1720_v61 = vld [vmem:[#allocation5 + $0x44] sm:$0xf]  ;;  %v1295_v62 = vor.u32 %v1725_v54, %v1292_v55  ;;  %v1268_v63 = vld [vmem:[#allocation5 + $0x50] sm:$0xf0] }
  0x2f   :  { %348 = vmatpush.bf16.msra.mxu0 %v1299_v44  ;;  %v1274_v0 = vld [vmem:[#allocation5 + $0x48] sm:$0xf]  ;;  %v1723_v1 = vld [vmem:[#allocation5 + $0x54] sm:$0xf0]  ;;  %v1721_v2 = vld [vmem:[#allocation5 + $0x4c] sm:$0xf]  ;;  %v1267_v4 = vor.u32 %v1722_v60, %v1266_v59  ;;  %v1271_v5 = vor.u32 %v1720_v61, %v1268_v63 }
  0x30   :  { %361 = vmatpush.bf16.msra.mxu1 %v1303_v45  ;;  %v1276_v3 = vld [vmem:[#allocation5 + $0x58] sm:$0xf0]  ;;  %v1275_v6 = vor.u32 %v1723_v1, %v1274_v0  ;;  %v1250_v7 = vld [vmem:[#allocation5 + $0x20] sm:$0xf]  ;;  %v1718_v8 = vld [vmem:[#allocation5 + $0x2c] sm:$0xf0] }
  0x31   :  { %374 = vmatpush.bf16.msra.mxu2 %v1307_v46  ;;  %387 = vmatpush.bf16.msra.mxu3 %v1311_v50  ;;  %v1716_v9 = vld [vmem:[#allocation5 + $0x24] sm:$0xf]  ;;  %v1279_v10 = vor.u32 %v1721_v2, %v1276_v3  ;;  %v1252_v11 = vld [vmem:[#allocation5 + $0x30] sm:$0xf0]  ;;  %v1258_v12 = vld [vmem:[#allocation5 + $0x28] sm:$0xf]  ;;  %v1251_v16 = vor.u32 %v1718_v8, %v1250_v7 }
  0x32   :  { %v1719_v13 = vld [vmem:[#allocation5 + $0x34] sm:$0xf0]  ;;  %v1717_v14 = vld [vmem:[#allocation5 + $0x2c] sm:$0xf]  ;;  %v1260_v15 = vld [vmem:[#allocation5 + $0x38] sm:$0xf0]  ;;  %v1255_v18 = vor.u32 %v1716_v9, %v1252_v11 }
  0x33   :  { %349 = vmatpush.bf16.msra.mxu0 %v1283_v56  ;;  %v1234_v17 = vld [vmem:[#allocation5] sm:$0xf]  ;;  %v1259_v19 = vor.u32 %v1719_v13, %v1258_v12  ;;  %v1714_v20 = vld [vmem:[#allocation5 + $0xc] sm:$0xf0]  ;;  %v1712_v21 = vld [vmem:[#allocation5 + $0x4] sm:$0xf]  ;;  %v1263_v23 = vor.u32 %v1717_v14, %v1260_v15 }
  0x34   :  { %362 = vmatpush.bf16.msra.mxu1 %v1287_v57  ;;  %v1236_v22 = vld [vmem:[#allocation5 + $0x10] sm:$0xf0]  ;;  %v1242_v24 = vld [vmem:[#allocation5 + $0x8] sm:$0xf]  ;;  %v1715_v25 = vld [vmem:[#allocation5 + $0x14] sm:$0xf0]  ;;  %v1235_v30 = vor.u32 %v1714_v20, %v1234_v17 }
  0x35   :  { %375 = vmatpush.bf16.msra.mxu2 %v1291_v58  ;;  %388 = vmatpush.bf16.msra.mxu3 %v1295_v62  ;;  %v1713_v26 = vld [vmem:[#allocation5 + $0xc] sm:$0xf]  ;;  %v1244_v27 = vld [vmem:[#allocation5 + $0x18] sm:$0xf0]  ;;  %v1418_v28 = vld [vmem:[#allocation8 + $0x70] sm:$0xf]  ;;  %v1239_v33 = vor.u32 %v1712_v21, %v1236_v22  ;;  %v1243_v34 = vor.u32 %v1715_v25, %v1242_v24 }
  0x36   :  { %v1759_v29 = vld [vmem:[#allocation8 + $0x74] sm:$0xf0]  ;;  %v1482_v31 = vld [vmem:[#allocation8 + $0xf0] sm:$0xf]  ;;  %v1247_v35 = vor.u32 %v1713_v26, %v1244_v27  ;;  %v1410_v37 = vld [vmem:[#allocation8 + $0x60] sm:$0xf] }
  0x37   :  { %350 = vmatpush.bf16.msra.mxu0 %v1267_v4  ;;  %v1775_v32 = vld [vmem:[#allocation8 + $0xf4] sm:$0xf0]  ;;  %v1419_v36 = vor.u32 %v1759_v29, %v1418_v28  ;;  %v1546_v38 = vld [vmem:[#allocation8 + $0x170] sm:$0xf]  ;;  %v1757_v41 = vld [vmem:[#allocation8 + $0x64] sm:$0xf0] }
  0x38   :  { %363 = vmatpush.bf16.msra.mxu1 %v1271_v5  ;;  %v1791_v39 = vld [vmem:[#allocation8 + $0x174] sm:$0xf0]  ;;  %v1483_v40 = vor.u32 %v1775_v32, %v1482_v31  ;;  %v1610_v42 = vld [vmem:[#allocation8 + $0x1f0] sm:$0xf]  ;;  %v1474_v45 = vld [vmem:[#allocation8 + $0xe0] sm:$0xf]  ;;  %v1411_v48 = vor.u32 %v1757_v41, %v1410_v37 }
  0x39   :  { %376 = vmatpush.bf16.msra.mxu2 %v1275_v6  ;;  %389 = vmatpush.bf16.msra.mxu3 %v1279_v10  ;;  %v1807_v43 = vld [vmem:[#allocation8 + $0x1f4] sm:$0xf0]  ;;  %v1773_v46 = vld [vmem:[#allocation8 + $0xe4] sm:$0xf0]  ;;  %v1547_v47 = vor.u32 %v1791_v39, %v1546_v38  ;;  %v1402_v50 = vld [vmem:[#allocation8 + $0x50] sm:$0xf] }
  0x3a   :  { %v142_v44 = vld [vmem:[#allocation2] sm:$0xf]  ;;  %v1611_v49 = vor.u32 %v1807_v43, %v1610_v42  ;;  %v1538_v51 = vld [vmem:[#allocation8 + $0x160] sm:$0xf]  ;;  %v1789_v52 = vld [vmem:[#allocation8 + $0x164] sm:$0xf0]  ;;  %v1475_v53 = vor.u32 %v1773_v46, %v1474_v45 }
  0x3b   :  { %351 = vmatpush.bf16.msra.mxu0 %v1251_v16  ;;  %v1755_v54 = vld [vmem:[#allocation8 + $0x54] sm:$0xf0]  ;;  %v1602_v55 = vld [vmem:[#allocation8 + $0x1e0] sm:$0xf]  ;;  %v1805_v56 = vld [vmem:[#allocation8 + $0x1e4] sm:$0xf0]  ;;  %v1539_v59 = vor.u32 %v1789_v52, %v1538_v51 }
  0x3c   :  { %364 = vmatpush.bf16.msra.mxu1 %v1255_v18  ;;  %v1466_v57 = vld [vmem:[#allocation8 + $0xd0] sm:$0xf]  ;;  %v1771_v58 = vld [vmem:[#allocation8 + $0xd4] sm:$0xf0]  ;;  %v1403_v60 = vor.u32 %v1755_v54, %v1402_v50  ;;  %v1603_v61 = vor.u32 %v1805_v56, %v1602_v55  ;;  %v1394_v62 = vld [vmem:[#allocation8 + $0x40] sm:$0xf] }
  0x3d   :  { %377 = vmatpush.bf16.msra.mxu2 %v1259_v19  ;;  %390 = vmatpush.bf16.msra.mxu3 %v1263_v23  ;;  %v1530_v63 = vld [vmem:[#allocation8 + $0x150] sm:$0xf]  ;;  %v1787_v0 = vld [vmem:[#allocation8 + $0x154] sm:$0xf0]  ;;  %v1467_v1 = vor.u32 %v1771_v58, %v1466_v57  ;;  %v1753_v2 = vld [vmem:[#allocation8 + $0x44] sm:$0xf0] }
  0x3e   :  { %v1594_v3 = vld [vmem:[#allocation8 + $0x1d0] sm:$0xf]  ;;  %v1803_v4 = vld [vmem:[#allocation8 + $0x1d4] sm:$0xf0]  ;;  %v1458_v5 = vld [vmem:[#allocation8 + $0xc0] sm:$0xf]  ;;  %v1531_v7 = vor.u32 %v1787_v0, %v1530_v63  ;;  %v1395_v8 = vor.u32 %v1753_v2, %v1394_v62 }
  0x3f   :  { %352 = vmatpush.bf16.msra.mxu0 %v1235_v30  ;;  %v1769_v6 = vld [vmem:[#allocation8 + $0xc4] sm:$0xf0]  ;;  %v1595_v9 = vor.u32 %v1803_v4, %v1594_v3  ;;  %v1386_v10 = vld [vmem:[#allocation8 + $0x30] sm:$0xf]  ;;  %v1522_v11 = vld [vmem:[#allocation8 + $0x140] sm:$0xf] }
  0x40   :  { %365 = vmatpush.bf16.msra.mxu1 %v1239_v33  ;;  %v1785_v12 = vld [vmem:[#allocation8 + $0x144] sm:$0xf0]  ;;  %v1459_v13 = vor.u32 %v1769_v6, %v1458_v5  ;;  %v1751_v14 = vld [vmem:[#allocation8 + $0x34] sm:$0xf0]  ;;  %v1586_v15 = vld [vmem:[#allocation8 + $0x1c0] sm:$0xf] }
  0x41   :  { %378 = vmatpush.bf16.msra.mxu2 %v1243_v34  ;;  %391 = vmatpush.bf16.msra.mxu3 %v1247_v35  ;;  %v1801_v16 = vld [vmem:[#allocation8 + $0x1c4] sm:$0xf0]  ;;  %v1450_v17 = vld [vmem:[#allocation8 + $0xb0] sm:$0xf]  ;;  %v1767_v18 = vld [vmem:[#allocation8 + $0xb4] sm:$0xf0]  ;;  %v1523_v19 = vor.u32 %v1785_v12, %v1522_v11  ;;  %v1387_v21 = vor.u32 %v1751_v14, %v1386_v10 }
  0x42   :  { %353 = vmatmul.bf16.vlgmr.msra.gmra.mxu0 %v142_v44  ;;  %v1378_v20 = vld [vmem:[#allocation8 + $0x20] sm:$0xf]  ;;  %v1587_v22 = vor.u32 %v1801_v16, %v1586_v15  ;;  %v1749_v23 = vld [vmem:[#allocation8 + $0x24] sm:$0xf0]  ;;  %v1514_v24 = vld [vmem:[#allocation8 + $0x130] sm:$0xf]  ;;  %v1451_v26 = vor.u32 %v1767_v18, %v1450_v17 }
  0x43   :  { %803 = vmatpush.bf16.msrb.mxu0 %v1419_v36  ;;  %366 = vmatmul.bf16.vlgmr.msra.gmra.mxu1 %v142_v44  ;;  %v1783_v25 = vld [vmem:[#allocation8 + $0x134] sm:$0xf0]  ;;  %v1442_v27 = vld [vmem:[#allocation8 + $0xa0] sm:$0xf]  ;;  %v1578_v28 = vld [vmem:[#allocation8 + $0x1b0] sm:$0xf]  ;;  %v1379_v32 = vor.u32 %v1749_v23, %v1378_v20 }
  0x44   :  { %816 = vmatpush.bf16.msrb.mxu1 %v1483_v40  ;;  %379 = vmatmul.bf16.vlgmr.msra.gmra.mxu2 %v142_v44  ;;  %v1799_v29 = vld [vmem:[#allocation8 + $0x1b4] sm:$0xf0]  ;;  %v1765_v30 = vld [vmem:[#allocation8 + $0xa4] sm:$0xf0]  ;;  %v1515_v31 = vor.u32 %v1783_v25, %v1514_v24  ;;  %v1370_v34 = vld [vmem:[#allocation8 + $0x10] sm:$0xf] }
  0x45   :  { %392 = vmatmul.bf16.vlgmr.msra.gmra.mxu3 %v142_v44  ;;  %829 = vmatpush.bf16.msrb.mxu2 %v1547_v47  ;;  %v1579_v33 = vor.u32 %v1799_v29, %v1578_v28  ;;  %v1506_v35 = vld [vmem:[#allocation8 + $0x120] sm:$0xf]  ;;  %v1781_v36 = vld [vmem:[#allocation8 + $0x124] sm:$0xf0]  ;;  %v1443_v37 = vor.u32 %v1765_v30, %v1442_v27  ;;  %v1747_v38 = vld [vmem:[#allocation8 + $0x14] sm:$0xf0] }
  0x46   :  { %842 = vmatpush.bf16.msrb.mxu3 %v1611_v49  ;;  %v1570_v39 = vld [vmem:[#allocation8 + $0x1a0] sm:$0xf]  ;;  %v1797_v40 = vld [vmem:[#allocation8 + $0x1a4] sm:$0xf0]  ;;  %v1434_v41 = vld [vmem:[#allocation8 + $0x90] sm:$0xf]  ;;  %v1507_v43 = vor.u32 %v1781_v36, %v1506_v35  ;;  %v1371_v45 = vor.u32 %v1747_v38, %v1370_v34 }
  0x47   :  { %804 = vmatpush.bf16.msrb.mxu0 %v1411_v48  ;;  %v1763_v42 = vld [vmem:[#allocation8 + $0x94] sm:$0xf0]  ;;  %v1362_v44 = vld [vmem:[#allocation8] sm:$0xf]  ;;  %v1571_v46 = vor.u32 %v1797_v40, %v1570_v39  ;;  %v1745_v47 = vld [vmem:[#allocation8 + $0x4] sm:$0xf0] }
  0x48   :  { %817 = vmatpush.bf16.msrb.mxu1 %v1475_v53  ;;  %v1498_v48 = vld [vmem:[#allocation8 + $0x110] sm:$0xf]  ;;  %v1779_v49 = vld [vmem:[#allocation8 + $0x114] sm:$0xf0]  ;;  %v1435_v50 = vor.u32 %v1763_v42, %v1434_v41  ;;  %v1426_v51 = vld [vmem:[#allocation8 + $0x80] sm:$0xf] }
  0x49   :  { %830 = vmatpush.bf16.msrb.mxu2 %v1539_v59  ;;  %v1562_v52 = vld [vmem:[#allocation8 + $0x190] sm:$0xf]  ;;  %v1795_v53 = vld [vmem:[#allocation8 + $0x194] sm:$0xf0]  ;;  %v1761_v54 = vld [vmem:[#allocation8 + $0x84] sm:$0xf0]  ;;  %v1499_v59 = vor.u32 %v1779_v49, %v1498_v48 }
  0x4a   :  { %843 = vmatpush.bf16.msrb.mxu3 %v1603_v61  ;;  %v1758_v55 = vld [vmem:[#allocation8 + $0x74] sm:$0xf]  ;;  %v1420_v56 = vld [vmem:[#allocation8 + $0x78] sm:$0xf0]  ;;  %v1563_v61 = vor.u32 %v1795_v53, %v1562_v52  ;;  %v1756_v62 = vld [vmem:[#allocation8 + $0x64] sm:$0xf]  ;;  %v1427_v2 = vor.u32 %v1761_v54, %v1426_v51 }
  0x4b   :  { %805 = vmatpush.bf16.msrb.mxu0 %v1403_v60  ;;  %v1774_v57 = vld [vmem:[#allocation8 + $0xf4] sm:$0xf]  ;;  %v1484_v58 = vld [vmem:[#allocation8 + $0xf8] sm:$0xf0]  ;;  %v1363_v60 = vor.u32 %v1745_v47, %v1362_v44  ;;  %v1490_v63 = vld [vmem:[#allocation8 + $0x100] sm:$0xf]  ;;  %v1423_v3 = vor.u32 %v1758_v55, %v1420_v56 }
  0x4c   :  { %818 = vmatpush.bf16.msrb.mxu1 %v1467_v1  ;;  %v1777_v0 = vld [vmem:[#allocation8 + $0x104] sm:$0xf0]  ;;  %v1554_v1 = vld [vmem:[#allocation8 + $0x180] sm:$0xf]  ;;  %v1790_v5 = vld [vmem:[#allocation8 + $0x174] sm:$0xf] }
  0x4d   :  { %831 = vmatpush.bf16.msrb.mxu2 %v1531_v7  ;;  %v1793_v4 = vld [vmem:[#allocation8 + $0x184] sm:$0xf0]  ;;  %v1548_v6 = vld [vmem:[#allocation8 + $0x178] sm:$0xf0]  ;;  %v1487_v7 = vor.u32 %v1774_v57, %v1484_v58  ;;  %v1772_v11 = vld [vmem:[#allocation8 + $0xe4] sm:$0xf] }
  0x4e   :  { %844 = vmatpush.bf16.msrb.mxu3 %v1595_v9  ;;  %v1806_v9 = vld [vmem:[#allocation8 + $0x1f4] sm:$0xf]  ;;  %v1612_v10 = vld [vmem:[#allocation8 + $0x1f8] sm:$0xf0]  ;;  %v1476_v12 = vld [vmem:[#allocation8 + $0xe8] sm:$0xf0]  ;;  %v1555_v14 = vor.u32 %v1793_v4, %v1554_v1  ;;  %v1551_v15 = vor.u32 %v1790_v5, %v1548_v6 }
  0x4f   :  { %806 = vmatpush.bf16.msrb.mxu0 %v1395_v8  ;;  %v1412_v8 = vld [vmem:[#allocation8 + $0x68] sm:$0xf0]  ;;  %v1615_v17 = vor.u32 %v1806_v9, %v1612_v10  ;;  %v1479_v18 = vor.u32 %v1772_v11, %v1476_v12  ;;  %v1404_v20 = vld [vmem:[#allocation8 + $0x58] sm:$0xf0]  ;;  %v1788_v25 = vld [vmem:[#allocation8 + $0x164] sm:$0xf] }
  0x50   :  { %819 = vmatpush.bf16.msrb.mxu1 %v1459_v13  ;;  %v1491_v13 = vor.u32 %v1777_v0, %v1490_v63  ;;  %v1415_v16 = vor.u32 %v1756_v62, %v1412_v8  ;;  %v1468_v23 = vld [vmem:[#allocation8 + $0xd8] sm:$0xf0]  ;;  %v1804_v27 = vld [vmem:[#allocation8 + $0x1e4] sm:$0xf]  ;;  %v1604_v29 = vld [vmem:[#allocation8 + $0x1e8] sm:$0xf0] }
  0x51   :  { %832 = vmatpush.bf16.msrb.mxu2 %v1523_v19  ;;  %v1754_v19 = vld [vmem:[#allocation8 + $0x54] sm:$0xf]  ;;  %v1607_v30 = vor.u32 %v1804_v27, %v1604_v29  ;;  %v1460_v35 = vld [vmem:[#allocation8 + $0xc8] sm:$0xf0]  ;;  %v1532_v38 = vld [vmem:[#allocation8 + $0x158] sm:$0xf0] }
  0x52   :  { %845 = vmatpush.bf16.msrb.mxu3 %v1587_v22  ;;  %v1407_v22 = vor.u32 %v1754_v19, %v1404_v20  ;;  %v1802_v39 = vld [vmem:[#allocation8 + $0x1d4] sm:$0xf]  ;;  %v1596_v41 = vld [vmem:[#allocation8 + $0x1d8] sm:$0xf0]  ;;  %v1784_v49 = vld [vmem:[#allocation8 + $0x144] sm:$0xf] }
  0x53   :  { %807 = vmatpush.bf16.msrb.mxu0 %v1387_v21  ;;  %v1770_v21 = vld [vmem:[#allocation8 + $0xd4] sm:$0xf]  ;;  %v1599_v42 = vor.u32 %v1802_v39, %v1596_v41  ;;  %v1388_v44 = vld [vmem:[#allocation8 + $0x38] sm:$0xf0]  ;;  %v1800_v51 = vld [vmem:[#allocation8 + $0x1c4] sm:$0xf] }
  0x54   :  { %820 = vmatpush.bf16.msrb.mxu1 %v1451_v26  ;;  %v1471_v24 = vor.u32 %v1770_v21, %v1468_v23  ;;  %v1540_v26 = vld [vmem:[#allocation8 + $0x168] sm:$0xf0]  ;;  %v1452_v47 = vld [vmem:[#allocation8 + $0xb8] sm:$0xf0]  ;;  %v1748_v54 = vld [vmem:[#allocation8 + $0x24] sm:$0xf] }
  0x55   :  { %833 = vmatpush.bf16.msrb.mxu2 %v1515_v31  ;;  %v1543_v28 = vor.u32 %v1788_v25, %v1540_v26  ;;  %v1752_v31 = vld [vmem:[#allocation8 + $0x44] sm:$0xf]  ;;  %v1588_v53 = vld [vmem:[#allocation8 + $0x1c8] sm:$0xf0]  ;;  %v1516_v62 = vld [vmem:[#allocation8 + $0x138] sm:$0xf0] }
  0x56   :  { %846 = vmatpush.bf16.msrb.mxu3 %v1579_v33  ;;  %v1768_v33 = vld [vmem:[#allocation8 + $0xc4] sm:$0xf]  ;;  %v1380_v55 = vld [vmem:[#allocation8 + $0x28] sm:$0xf0]  ;;  %v1591_v56 = vor.u32 %v1800_v51, %v1588_v53  ;;  %v1798_v63 = vld [vmem:[#allocation8 + $0x1b4] sm:$0xf] }
  0x57   :  { %808 = vmatpush.bf16.msrb.mxu0 %v1379_v32  ;;  %v1396_v32 = vld [vmem:[#allocation8 + $0x48] sm:$0xf0]  ;;  %v1463_v36 = vor.u32 %v1768_v33, %v1460_v35  ;;  %v1383_v57 = vor.u32 %v1748_v54, %v1380_v55  ;;  %v1764_v58 = vld [vmem:[#allocation8 + $0xa4] sm:$0xf]  ;;  %v1580_v1 = vld [vmem:[#allocation8 + $0x1b8] sm:$0xf0] }
  0x58   :  { %821 = vmatpush.bf16.msrb.mxu1 %v1443_v37  ;;  %v1399_v34 = vor.u32 %v1752_v31, %v1396_v32  ;;  %v1786_v37 = vld [vmem:[#allocation8 + $0x154] sm:$0xf]  ;;  %v1372_v4 = vld [vmem:[#allocation8 + $0x18] sm:$0xf0]  ;;  %v1780_v8 = vld [vmem:[#allocation8 + $0x124] sm:$0xf] }
  0x59   :  { %834 = vmatpush.bf16.msrb.mxu2 %v1507_v43  ;;  %v1535_v40 = vor.u32 %v1786_v37, %v1532_v38  ;;  %v1750_v43 = vld [vmem:[#allocation8 + $0x34] sm:$0xf]  ;;  %v1508_v9 = vld [vmem:[#allocation8 + $0x128] sm:$0xf0]  ;;  %v1796_v12 = vld [vmem:[#allocation8 + $0x1a4] sm:$0xf] }
  0x5a   :  { %847 = vmatpush.bf16.msrb.mxu3 %v1571_v46  ;;  %v1391_v46 = vor.u32 %v1750_v43, %v1388_v44  ;;  %v1762_v5 = vld [vmem:[#allocation8 + $0x94] sm:$0xf]  ;;  %v1511_v11 = vor.u32 %v1780_v8, %v1508_v9  ;;  %v1564_v25 = vld [vmem:[#allocation8 + $0x198] sm:$0xf0]  ;;  %v1776_v27 = vld [vmem:[#allocation8 + $0x104] sm:$0xf] }
  0x5b   :  { %809 = vmatpush.bf16.msrb.mxu0 %v1371_v45  ;;  %v1766_v45 = vld [vmem:[#allocation8 + $0xb4] sm:$0xf]  ;;  %v1792_v29 = vld [vmem:[#allocation8 + $0x184] sm:$0xf]  ;;  %v1556_v32 = vld [vmem:[#allocation8 + $0x188] sm:$0xf0] }
  0x5c   :  { %822 = vmatpush.bf16.msrb.mxu1 %v1435_v50  ;;  %v1455_v48 = vor.u32 %v1766_v45, %v1452_v47  ;;  %v1524_v50 = vld [vmem:[#allocation8 + $0x148] sm:$0xf0]  ;;  %v1778_v21 = vld [vmem:[#allocation8 + $0x114] sm:$0xf]  ;;  %v1559_v33 = vor.u32 %v1792_v29, %v1556_v32  ;;  %v1823_v32 = vld [vmem:[#allocation11 + $0x78] sm:$0xff]  ;;  %s1219_s20 = sshll.u32 %s2191_s11, 4  ;;  %s1220_s20 = int_to_ptr.hbm [resolvable:$true] %s1219_s20 }
  0x5d   :  { %835 = vmatpush.bf16.msrb.mxu2 %v1499_v59  ;;  %v1527_v52 = vor.u32 %v1784_v49, %v1524_v50  ;;  %v1444_v59 = vld [vmem:[#allocation8 + $0xa8] sm:$0xf0]  ;;  %v1794_v23 = vld [vmem:[#allocation8 + $0x194] sm:$0xf] }
  0x5e   :  { %848 = vmatpush.bf16.msrb.mxu3 %v1563_v61  ;;  %v1782_v61 = vld [vmem:[#allocation8 + $0x134] sm:$0xf]  ;;  %v1567_v26 = vor.u32 %v1794_v23, %v1564_v25 }
  0x5f   :  { %810 = vmatpush.bf16.msrb.mxu0 %v1363_v60  ;;  %v1447_v60 = vor.u32 %v1764_v58, %v1444_v59  ;;  %v1519_v0 = vor.u32 %v1782_v61, %v1516_v62 }
  0x60   :  { %823 = vmatpush.bf16.msrb.mxu1 %v1427_v2  ;;  %v1583_v2 = vor.u32 %v1798_v63, %v1580_v1 }
  0x61   :  { %836 = vmatpush.bf16.msrb.mxu2 %v1491_v13  ;;  %v1572_v13 = vld [vmem:[#allocation8 + $0x1a8] sm:$0xf0] }
  0x62   :  { %849 = vmatpush.bf16.msrb.mxu3 %v1555_v14  ;;  %v1744_v14 = vld [vmem:[#allocation8 + $0x4] sm:$0xf] }
  0x63   :  { %855 = vmatpush.bf16.msra.mxu0 %v1423_v3  ;;  %v1746_v3 = vld [vmem:[#allocation8 + $0x14] sm:$0xf] }
  0x64   :  { %868 = vmatpush.bf16.msra.mxu1 %v1487_v7  ;;  %v1375_v6 = vor.u32 %v1746_v3, %v1372_v4  ;;  %v1436_v7 = vld [vmem:[#allocation8 + $0x98] sm:$0xf0] }
  0x65   :  { %881 = vmatpush.bf16.msra.mxu2 %v1551_v15  ;;  %v1439_v10 = vor.u32 %v1762_v5, %v1436_v7  ;;  %v1575_v15 = vor.u32 %v1796_v12, %v1572_v13 }
  0x66   :  { %894 = vmatpush.bf16.msra.mxu3 %v1615_v17  ;;  %v1760_v17 = vld [vmem:[#allocation8 + $0x84] sm:$0xf] }
  0x67   :  { %856 = vmatpush.bf16.msra.mxu0 %v1415_v16  ;;  %v1364_v16 = vld [vmem:[#allocation8 + $0x8] sm:$0xf0] }
  0x68   :  { %869 = vmatpush.bf16.msra.mxu1 %v1479_v18  ;;  %v1428_v18 = vld [vmem:[#allocation8 + $0x88] sm:$0xf0]  ;;  %v1367_v19 = vor.u32 %v1744_v14, %v1364_v16 }
  0x69   :  { %882 = vmatpush.bf16.msra.mxu2 %v1543_v28  ;;  %v1431_v20 = vor.u32 %v1760_v17, %v1428_v18  ;;  %v1492_v28 = vld [vmem:[#allocation8 + $0x108] sm:$0xf0] }
  0x6a   :  { %895 = vmatpush.bf16.msra.mxu3 %v1607_v30  ;;  %v175_v30 = vld [vmem:[#allocation7] sm:$0xf]  ;;  %v1495_v31 = vor.u32 %v1776_v27, %v1492_v28 }
  0x6b   :  { %857 = vmatpush.bf16.msra.mxu0 %v1407_v22  ;;  %v1500_v22 = vld [vmem:[#allocation8 + $0x118] sm:$0xf0]  ;;  %v178_v35 = vperm.slane %v175_v30, 1  ;;  %v180_v43 = vperm.slane %v175_v30, 3 }
  0x6c   :  { %870 = vmatpush.bf16.msra.mxu1 %v1471_v24  ;;  %v1503_v24 = vor.u32 %v1778_v21, %v1500_v22 }
  0x6d   :  { %883 = vmatpush.bf16.msra.mxu2 %v1535_v40 }
  0x6e   :  { %896 = vmatpush.bf16.msra.mxu3 %v1599_v42  ;;  %v179_v42 = vperm.slane %v175_v30, 2 }
  0x6f   :  { %858 = vmatpush.bf16.msra.mxu0 %v1399_v34  ;;  %v177_v34 = vperm.slane %v175_v30, 0  ;;  %v2072_v30 = vmov 256.0  }
  0x70   :  { %871 = vmatpush.bf16.msra.mxu1 %v1463_v36  ;;  %1849 = vrcp.f32 %v2072_v30 }
  0x71   :  { %884 = vmatpush.bf16.msra.mxu2 %v1527_v52 }
  0x72   :  { %897 = vmatpush.bf16.msra.mxu3 %v1591_v56 }
  0x73   :  { %859 = vmatpush.bf16.msra.mxu0 %v1391_v46 }
  0x74   :  { %872 = vmatpush.bf16.msra.mxu1 %v1455_v48 }
  0x75   :  { %885 = vmatpush.bf16.msra.mxu2 %v1519_v0 }
  0x76   :  { %898 = vmatpush.bf16.msra.mxu3 %v1583_v2  ;;  %v477_v2 = vld [vmem:[%s2184_s4] sm:$0x3] }
  0x77   :  { %860 = vmatpush.bf16.msra.mxu0 %v1383_v57  ;;  %v479_v4 = vperm.slane %v477_v2, 0  ;;  %v480_v9 = vperm.slane %v477_v2, 1  ;;  %v1828_v2 = vld [vmem:[#allocation13 + $0x20] sm:$0xff] }
  0x78   :  { %873 = vmatpush.bf16.msra.mxu1 %v1447_v60 }
  0x79   :  { %886 = vmatpush.bf16.msra.mxu2 %v1511_v11 }
  0x7a   :  { %899 = vmatpush.bf16.msra.mxu3 %v1575_v15 }
  0x7b   :  { %861 = vmatpush.bf16.msra.mxu0 %v1375_v6 }
  0x7c   :  { %874 = vmatpush.bf16.msra.mxu1 %v1439_v10 }
  0x7d   :  { %887 = vmatpush.bf16.msra.mxu2 %v1503_v24 }
  0x7e   :  { %900 = vmatpush.bf16.msra.mxu3 %v1567_v26 }
  0x7f   :  { %862 = vmatpush.bf16.msra.mxu0 %v1367_v19 }
  0x80   :  { %875 = vmatpush.bf16.msra.mxu1 %v1431_v20 }
  0x81   :  { %888 = vmatpush.bf16.msra.mxu2 %v1495_v31  ;;  %v1815_v31 = vld [vmem:[#allocation11 + $0x38] sm:$0xff] }
  0x82   :  { %901 = vmatpush.bf16.msra.mxu3 %v1559_v33  ;;  %v1850_v33 = vpop.eup %1849 }
  0x83   :  { %vm921_vm6 = vweird.f32 %v1850_v33 }
  0xbf   :  { %v354_v36 = vpop.f32.mrf.mxu0 }
  0xc0   :  { %v355_v37 = vadd.f32 %v354_v36, %v177_v34  ;;  %v367_v38 = vpop.f32.mrf.mxu1  ;;  %v917_v34 = vmul.f32 256.0, %v1850_v33 }
  0xc1   :  { %v368_v39 = vadd.f32 %v367_v38, %v178_v35 }
  0xc2   :  { %vm397_vm0 = vcmp.gt.f32.partialorder %v355_v37, 0.0  ;;  %v401_v40 = vmul.f32 0.2, %v355_v37  ;;  %v918_v35 = vsub.f32 1.0, %v917_v34 }
  0xc3   :  { %vm398_vm1 = vcmp.gt.f32.partialorder %v368_v39, 0.0  ;;  %v402_v41 = vmul.f32 0.2, %v368_v39 }
  0xc4   :  { %v405_v44 = vsel %vm397_vm0, %v355_v37, %v401_v40  ;;  %v919_v36 = vmul.f32 %v1850_v33, %v918_v35 }
  0xc5   :  { %v409_v45 = vpack.c.bf16 %v405_v44, %v405_v44  ;;  %v406_v46 = vsel %vm398_vm1, %v368_v39, %v402_v41 }
  0xc6   :  { %v410_v48 = vpack.c.bf16 %v406_v46, %v406_v46  ;;  %v920_v37 = vadd.f32 %v1850_v33, %v919_v36  ;;  %v1814_v46 = vld [vmem:[#allocation11 + $0x30] sm:$0xff] }
  0xc7   :  { %v380_v47 = vpop.f32.mrf.mxu2  ;;  %v356_v51 = vpop.f32.mrf.mxu0  ;;  %811 = vmatmul.bf16.vlgmr.msrb.gmra.mxu0 %v409_v45 }
  0xc8   :  { %v381_v49 = vadd.f32 %v380_v47, %v179_v42  ;;  %v393_v50 = vpop.f32.mrf.mxu3  ;;  %824 = vmatmul.bf16.vlgmr.msrb.gmra.mxu1 %v410_v48  ;;  %v369_v53 = vpop.f32.mrf.mxu1  ;;  %1095 = vmatpush.bf16.msrb.mxu0 %v1815_v31  ;;  %v922_v38 = vsel %vm921_vm6, %v1850_v33, %v920_v37  ;;  %v1822_v47 = vld [vmem:[#allocation11 + $0x70] sm:$0xff]  ;;  %v1820_v51 = vld [vmem:[#allocation11 + $0x60] sm:$0xff] }
  0xc9   :  { %v394_v52 = vadd.f32 %v393_v50, %v180_v43  ;;  %1108 = vmatpush.bf16.msrb.mxu1 %v1823_v32  ;;  %v1812_v50 = vld [vmem:[#allocation11 + $0x20] sm:$0xff]  ;;  %v1819_v53 = vld [vmem:[#allocation11 + $0x58] sm:$0xff] }
  0xca   :  { %vm399_vm2 = vcmp.gt.f32.partialorder %v381_v49, 0.0  ;;  %v403_v54 = vmul.f32 0.2, %v381_v49 }
  0xcb   :  { %vm400_vm3 = vcmp.gt.f32.partialorder %v394_v52, 0.0  ;;  %v404_v55 = vmul.f32 0.2, %v394_v52 }
  0xcc   :  { %v407_v56 = vsel %vm399_vm2, %v381_v49, %v403_v54  ;;  %1096 = vmatpush.bf16.msrb.mxu0 %v1814_v46  ;;  %v1821_v49 = vld [vmem:[#allocation11 + $0x68] sm:$0xff]  ;;  %v1810_v54 = vld [vmem:[#allocation11 + $0x10] sm:$0xff] }
  0xcd   :  { %v411_v57 = vpack.c.bf16 %v407_v56, %v407_v56  ;;  %v408_v58 = vsel %vm400_vm3, %v394_v52, %v404_v55  ;;  %1109 = vmatpush.bf16.msrb.mxu1 %v1822_v47  ;;  %v1811_v52 = vld [vmem:[#allocation11 + $0x18] sm:$0xff]  ;;  %v1818_v55 = vld [vmem:[#allocation11 + $0x50] sm:$0xff]  ;;  %v1809_v56 = vld [vmem:[#allocation11 + $0x8] sm:$0xff] }
  0xce   :  { %v412_v59 = vpack.c.bf16 %v408_v58, %v408_v58  ;;  %v1808_v58 = vld [vmem:[#allocation11] sm:$0xff] }
  0xcf   :  { %v382_v60 = vpop.f32.mrf.mxu2  ;;  %837 = vmatmul.bf16.vlgmr.msrb.gmra.mxu2 %v411_v57 }
  0xd0   :  { %v395_v61 = vpop.f32.mrf.mxu3  ;;  %850 = vmatmul.bf16.vlgmr.msrb.gmra.mxu3 %v412_v59  ;;  %v1831_v60 = vld [vmem:[#allocation13 + $0x38] sm:$0xff] }
  0xd1   :  { %1110 = vmatpush.bf16.msrb.mxu1 %v1821_v49  ;;  %1193 = vmatpush.bf16.msrb.mxu2 %v1831_v60 }
  0xd5   :  { %1111 = vmatpush.bf16.msrb.mxu1 %v1820_v51 }
  0xd7   :  { %863 = vmatmul.bf16.vlgmr.msra.gmra.mxu0 %v409_v45 }
  0xd8   :  { %876 = vmatmul.bf16.vlgmr.msra.gmra.mxu1 %v410_v48  ;;  %v1813_v48 = vld [vmem:[#allocation11 + $0x28] sm:$0xff] }
  0xd9   :  { %1097 = vmatpush.bf16.msrb.mxu0 %v1813_v48  ;;  %1112 = vmatpush.bf16.msrb.mxu1 %v1819_v53 }
  0xdd   :  { %1098 = vmatpush.bf16.msrb.mxu0 %v1812_v50  ;;  %1113 = vmatpush.bf16.msrb.mxu1 %v1818_v55 }
  0xdf   :  { %889 = vmatmul.bf16.vlgmr.msra.gmra.mxu2 %v411_v57  ;;  %v1817_v57 = vld [vmem:[#allocation11 + $0x48] sm:$0xff] }
  0xe0   :  { %902 = vmatmul.bf16.vlgmr.msra.gmra.mxu3 %v412_v59  ;;  %v1816_v59 = vld [vmem:[#allocation11 + $0x40] sm:$0xff] }
  0xe1   :  { %1099 = vmatpush.bf16.msrb.mxu0 %v1811_v52  ;;  %1114 = vmatpush.bf16.msrb.mxu1 %v1817_v57 }
  0xe5   :  { %1100 = vmatpush.bf16.msrb.mxu0 %v1810_v54  ;;  %1115 = vmatpush.bf16.msrb.mxu1 %v1816_v59 }
  0xe9   :  { %1101 = vmatpush.bf16.msrb.mxu0 %v1809_v56 }
  0xed   :  { %1102 = vmatpush.bf16.msrb.mxu0 %v1808_v58 }
 0x144   :  { %v812_v62 = vpop.f32.mrf.mxu0 }
 0x145   :  { %v825_v63 = vpop.f32.mrf.mxu1  ;;  %v813_v8 = vadd.f32 %v812_v62, %v479_v4 }
 0x147   :  { %v826_v11 = vadd.f32 %v825_v63, %v813_v8  ;;  %v1830_v63 = vld [vmem:[#allocation13 + $0x30] sm:$0xff] }
 0x148   :  { %1194 = vmatpush.bf16.msrb.mxu2 %v1830_v63  ;;  %v1826_v8 = vld [vmem:[#allocation13 + $0x10] sm:$0xff] }
 0x14c   :  { %v814_v0 = vpop.f32.mrf.mxu0 }
 0x14d   :  { %v827_v1 = vpop.f32.mrf.mxu1 }
 0x14e   :  { %v1829_v1 = vld [vmem:[#allocation13 + $0x28] sm:$0xff] }
 0x14f   :  { %1195 = vmatpush.bf16.msrb.mxu2 %v1829_v1 }
 0x152   :  { %v838_v3 = vpop.f32.mrf.mxu2 }
 0x153   :  { %v851_v5 = vpop.f32.mrf.mxu3  ;;  %v839_v13 = vadd.f32 %v838_v3, %v826_v11  ;;  %1196 = vmatpush.bf16.msrb.mxu2 %v1828_v2 }
 0x154   :  { %v864_v6 = vpop.f32.mrf.mxu0 }
 0x155   :  { %v877_v7 = vpop.f32.mrf.mxu1  ;;  %v865_v14 = vadd.f32 %v864_v6, %v480_v9  ;;  %v852_v17 = vadd.f32 %v851_v5, %v839_v13  ;;  %v1827_v5 = vld [vmem:[#allocation13 + $0x18] sm:$0xff] }
 0x157   :  { %v878_v18 = vadd.f32 %v877_v7, %v865_v14  ;;  %v909_v22 = vmul.f32 0.2, %v852_v17  ;;  %vm907_vm4 = vcmp.gt.f32.partialorder %v852_v17, 0.0  ;;  %1197 = vmatpush.bf16.msrb.mxu2 %v1827_v5 }
 0x159   :  { %v911_v25 = vsel %vm907_vm4, %v852_v17, %v909_v22 }
 0x15a   :  { %v840_v10 = vpop.f32.mrf.mxu2 }
 0x15b   :  { %v853_v12 = vpop.f32.mrf.mxu3  ;;  %v945_v10 = vld [vmem:[%s2185_s5] sm:$0x3]  ;;  %1198 = vmatpush.bf16.msrb.mxu2 %v1826_v8 }
 0x15c   :  { %v866_v15 = vpop.f32.mrf.mxu0  ;;  %v953_v12 = vld [vmem:[#allocation10] sm:$0x3]  ;;  %v947_v13 = vperm.slane %v945_v10, 0  ;;  %v948_v14 = vperm.slane %v945_v10, 1 }
 0x15d   :  { %v879_v16 = vpop.f32.mrf.mxu1 }
 0x162   :  { %v890_v19 = vpop.f32.mrf.mxu2 }
 0x163   :  { %v891_v20 = vadd.f32 %v890_v19, %v878_v18  ;;  %v903_v21 = vpop.f32.mrf.mxu3  ;;  %v955_v18 = vperm.slane %v953_v12, 0  ;;  %v956_v19 = vperm.slane %v953_v12, 1 }
 0x165   :  { %v904_v23 = vadd.f32 %v903_v21, %v891_v20 }
 0x167   :  { %v910_v24 = vmul.f32 0.2, %v904_v23  ;;  %vm908_vm5 = vcmp.gt.f32.partialorder %v904_v23, 0.0 }
 0x169   :  { %v912_v26 = vsel %vm908_vm5, %v904_v23, %v910_v24 }
 0x16a   :  { %v892_v27 = vpop.f32.mrf.mxu2  ;;  %v913_v28 = vadd.f32 %v912_v26, %v911_v25 }
 0x16b   :  { %v905_v29 = vpop.f32.mrf.mxu3  ;;  %v1824_v27 = vld [vmem:[#allocation13] sm:$0xff] }
 0x16c   :  { %914 = vadd.xlane.f32.xlu0 %v913_v28  ;;  %v1847_v28 = vld [vmem:[%s2188_s8] ss:$0 sm:$0xff]  ;;  %s2073_s8 = smov [#allocation14]  }
 0x16d   :  { %s1217_s17 = sshll.u32 %s2073_s8, 4  ;;  %s1218_s17 = int_to_ptr.vmem [resolvable:$true] %s1217_s17 }
 0x1df   :  { %v915_v39 = vpop.xlane.xlu0 %914 }
 0x1e0   :  { %v923_v40 = vmul.f32 %v922_v38, %v915_v39 }
 0x1e2   :  { %v2158_v41 = vsub.f32 %v911_v25, %v923_v40  ;;  %v2160_v42 = vsub.f32 %v912_v26, %v923_v40  ;;  %v1825_v26 = vld [vmem:[#allocation13 + $0x8] sm:$0xff] }
 0x1e3   :  { %1199 = vmatpush.bf16.msrb.mxu2 %v1825_v26 }
 0x1e4   :  { %v926_v43 = vmul.f32 %v2158_v41, %v2158_v41  ;;  %v927_v44 = vmul.f32 %v2160_v42, %v2160_v42 }
 0x1e6   :  { %v928_v45 = vadd.f32 %v927_v44, %v926_v43 }
 0x1e7   :  { %1200 = vmatpush.bf16.msrb.mxu2 %v1824_v27 }
 0x1e8   :  { %929 = vadd.xlane.f32.xlu0 %v928_v45 }
 0x25b   :  { %v930_v61 = vpop.xlane.xlu0 %929 }
 0x25c   :  { %v931_v62 = vmul.f32 %v930_v61, %v922_v38  ;;  %v1848_v38 = vld [vmem:[%s2190_s10] ss:$0 sm:$0xff] }
 0x25e   :  { %v932_v0 = vadd.f32 1e-05, %v931_v62 }
 0x260   :  { %1851 = vrsqrt.f32 %v932_v0  ;;  %vm939_vm8 = vweird.f32 %v932_v0 }
 0x266   :  { %v1852_v3 = vpop.eup %1851 }
 0x267   :  { %v934_v4 = vmul.f32 %v1852_v3, %v932_v0  ;;  %vm940_vm7 = vweird.f32 %v1852_v3 }
 0x268   :  { %vm941_vm9 = vmor %vm939_vm8, %vm940_vm7 }
 0x269   :  { %v935_v6 = vmul.f32 %v1852_v3, %v934_v4 }
 0x26b   :  { %v936_v7 = vmul.f32 0.5, %v935_v6 }
 0x26d   :  { %v937_v9 = vsub.f32 1.5, %v936_v7 }
 0x26f   :  { %v938_v11 = vmul.f32 %v1852_v3, %v937_v9 }
 0x271   :  { %v942_v15 = vsel %vm941_vm9, %v1852_v3, %v938_v11 }
 0x272   :  { %v943_v16 = vmul.f32 %v942_v15, %v2158_v41  ;;  %v944_v17 = vmul.f32 %v942_v15, %v2160_v42 }
 0x274   :  { %v951_v20 = vmul.f32 %v947_v13, %v943_v16  ;;  %v952_v21 = vmul.f32 %v948_v14, %v944_v17 }
 0x276   :  { %v959_v22 = vadd.f32 %v955_v18, %v951_v20  ;;  %v960_v23 = vadd.f32 %v956_v19, %v952_v21 }
 0x278   :  { %v961_v24 = vpack.c.bf16 %v959_v22, %v959_v22  ;;  %v962_v25 = vpack.c.bf16 %v960_v23, %v960_v23 }
 0x27a   :  { %1103 = vmatmul.bf16.vlgmr.msrb.gmra.mxu0 %v961_v24  ;;  %1116 = vmatmul.bf16.vlgmr.msrb.gmra.mxu1 %v962_v25 }
 0x2f7   :  { %v1104_v29 = vpop.f32.mrf.mxu0  ;;  %v1117_v30 = vpop.f32.mrf.mxu1 }
 0x2f8   :  { %v1105_v31 = vadd.f32 %v1847_v28, %v1104_v29 }
 0x2fa   :  { %v1118_v32 = vadd.f32 %v1117_v30, %v1105_v31 }
 0x2fc   :  { %vm1121_vm10 = vcmp.gt.f32.partialorder %v1118_v32, 0.0  ;;  %v1122_v33 = vmul.f32 0.2, %v1118_v32 }
 0x2fe   :  { %v1123_v34 = vsel %vm1121_vm10, %v1118_v32, %v1122_v33 }
 0x2ff   :  { %v1124_v35 = vpack.c.bf16 %v1123_v34, %v1123_v34  ;;  %v1106_v36 = vpop.f32.mrf.mxu0  ;;  %v1119_v37 = vpop.f32.mrf.mxu1 }
 0x301   :  { %1201 = vmatmul.bf16.vlgmr.msrb.gmra.mxu2 %v1124_v35 }
 0x384   :  { %v1202_v39 = vpop.f32.mrf.mxu2 }
 0x385   :  { %v1203_v40 = vadd.f32 %v1848_v38, %v1202_v39 }
 0x387   :  { %v1206_v41 = vsub.f32 0.0, %v1203_v40 }
 0x389   :  { %v1207_v42 = vmul.f32 1.442695, %v1206_v41 }
 0x38b   :  { %1853 = vpow2.f32 %v1207_v42 }
 0x38c   :  { %v1204_v43 = vpop.f32.mrf.mxu2 }
 0x391   :  { %v1854_v44 = vpop.eup %1853 }
 0x392   :  { %v1209_v45 = vadd.f32 1.0, %v1854_v44 }
 0x394   :  { %1855 = vrcp.f32 %v1209_v45 }
 0x39a   :  { %v1856_v46 = vpop.eup %1855 }
 0x39b   :  { %1211 = vst [vmem:[#allocation14] sm:$0xff] %v1856_v46 }
 0x39c   :  { %1222 = dma.vmem_to_hbm [thread:$0]  %s1218_s17, 128, %s1220_s20, [#allocation4]  }
 0x39d   :  { %2057 = dma.done.wait [#allocation4], 128  }
 0x39e   :  { %2058 = vsyncadd [#allocation4], 4294967168 }
 0x39f   :  { %1227 = vsyncpa [#allocation3], 1 }
 0x3a0   :  { %1228 = vsyncpa [#allocation6], 1 }
 0x3a1   :  { %1229 = vsyncpa [#allocation9], 1 }
 0x3a2   :  { %1230 = vsyncpa [#allocation12], 1 }
 0x3a3   :  { %1231 = vsyncpa [#allocation4], 1 }

</bundles_post_ra>
